<compile_context>
chip_gen: v7x
topology: tpu7x:2x2x1
jax: 0.10.0
libtpu: 0.0.40
codegen_flags: <defaults>
</compile_context>

<pallas_src>
import functools

import jax
import jax.numpy as jnp
from jax.experimental import pallas as pl
from jax.experimental.pallas import tpu as pltpu


def _round_up(x, m):
    return (x + m - 1) // m * m


def _mlp_kernel(x1_ref, x2_ref, t_ref, w23_ref, out_ref):
    """x1/x2: (TM,1) int32; T: (VP, NH); W23: (NH, VP); out: (TM, VP)."""
    tm = out_ref.shape[0]
    vp = t_ref.shape[0]
    # In-kernel gather as a one-hot matmul (exact: one-hot entries are 0/1/2).
    lane = jax.lax.broadcasted_iota(jnp.int32, (tm, vp), 1)
    sel = (jnp.where(lane == x1_ref[...], 1.0, 0.0)
           + jnp.where(lane == x2_ref[...], 1.0, 0.0)).astype(t_ref.dtype)
    # h_pre = T[x1] + T[x2]   (B, n_blocks*hidden), f32 accumulation on the MXU.
    h = jnp.dot(sel, t_ref[...], preferred_element_type=jnp.float32)
    # SiLU in f32 on the VPU/EUP.
    h = h * jax.nn.sigmoid(h)
    # out = silu(h_pre) @ (W2_bd @ W3.T), lane-dense (padded-vocab) store.
    out = jnp.dot(h.astype(w23_ref.dtype), w23_ref[...],
                  preferred_element_type=jnp.float32)
    out_ref[...] = out.astype(out_ref.dtype)


def precompute_tables(embedding, linear1_weights, linear2_weights, linear3_weight,
                      dtype=jnp.float32):
    """One-time (model-load) weight folds; hoist out of the per-call path.

    Returns:
      t_table:  (vocab_pad, n_blocks*hidden)  = pad(E @ blockdiag(W1))
      w23:      (n_blocks*hidden, vocab_pad)  = pad(blockdiag(W2) @ W3.T)
    """
    vocab, _ = embedding.shape
    n_blocks, _, hidden = linear1_weights.shape
    nh = n_blocks * hidden
    w1bd = jax.scipy.linalg.block_diag(*[linear1_weights[i] for i in range(n_blocks)])
    w2bd = jax.scipy.linalg.block_diag(*[linear2_weights[i] for i in range(n_blocks)])
    t_table = embedding @ w1bd                     # (vocab, nh)
    w23 = w2bd @ linear3_weight.T                  # (nh, vocab)
    vp = _round_up(vocab, 128)                     # lane-dense vocab padding
    t_pad = jnp.zeros((vp, nh), dtype).at[:vocab, :].set(t_table.astype(dtype))
    w23_pad = jnp.zeros((nh, vp), dtype).at[:, :vocab].set(w23.astype(dtype))
    return t_pad, w23_pad


@functools.partial(jax.jit, static_argnames=("vocab",))
def mlp_forward(x1, x2, t_table, w23_table, *, vocab):
    """Pallas-backed forward: x1, x2 int32 (B,) -> (B, vocab) float32."""
    B = x1.shape[0]
    vp, nh = t_table.shape

    tm = min(128, _round_up(B, 8))                 # batch tile (multiple of 8 sublanes)
    bp = _round_up(B, tm)
    x1p = jnp.pad(x1.astype(jnp.int32), (0, bp - B)).reshape(bp, 1)
    x2p = jnp.pad(x2.astype(jnp.int32), (0, bp - B)).reshape(bp, 1)

    out = pl.pallas_call(
        _mlp_kernel,
        out_shape=jax.ShapeDtypeStruct((bp, vp), jnp.float32),
        grid=(bp // tm,),
        in_specs=[
            pl.BlockSpec((tm, 1), lambda i: (i, 0)),      # token ids 1
            pl.BlockSpec((tm, 1), lambda i: (i, 0)),      # token ids 2
            pl.BlockSpec((vp, nh), lambda i: (0, 0)),     # T table (resident)
            pl.BlockSpec((nh, vp), lambda i: (0, 0)),     # W23 (resident)
        ],
        out_specs=pl.BlockSpec((tm, vp), lambda i: (i, 0)),
        compiler_params=pltpu.CompilerParams(
            dimension_semantics=("parallel",)),           # shard batch tiles across TCs (v7x)
    )(x1p, x2p, t_table, w23_table)

    return out[:B, :vocab]


def _reference_forward(x1, x2, embedding, w1, w2, w3):
    """Pure-JAX transcription of the PyTorch forward (verification)."""
    n_blocks = w1.shape[0]
    e1 = jnp.take(embedding, x1, axis=0).reshape(-1, n_blocks, 2)
    e2 = jnp.take(embedding, x2, axis=0).reshape(-1, n_blocks, 2)
    h1 = jnp.einsum('bnj,njk->bnk', e1, w1)
    h2 = jnp.einsum('bnj,njk->bnk', e2, w1)
    h = jax.nn.silu(h1 + h2)
    y = jnp.einsum('bnk,nkj->bnj', h, w2).reshape(h.shape[0], -1)
    return y @ w3.T


if __name__ == "__main__":
    vocab_size = 23
    embed_dim = 8          # -> n_blocks = 4
    hidden_dim = 16
    batch = 8
    n_blocks = embed_dim // 2

    key = jax.random.PRNGKey(0)
    k_emb, k_w1, k_w2, k_w3, k_x1, k_x2 = jax.random.split(key, 6)

    embedding = jax.random.normal(k_emb, (vocab_size, embed_dim), dtype=jnp.float32)
    linear1_weights = jax.random.normal(k_w1, (n_blocks, 2, hidden_dim), dtype=jnp.float32)
    linear2_weights = jax.random.normal(k_w2, (n_blocks, hidden_dim, 2), dtype=jnp.float32)
    linear3_weight = jax.random.normal(k_w3, (vocab_size, embed_dim), dtype=jnp.float32)

    x1 = jax.random.randint(k_x1, (batch,), 0, vocab_size, dtype=jnp.int32)
    x2 = jax.random.randint(k_x2, (batch,), 0, vocab_size, dtype=jnp.int32)

    ref = _reference_forward(x1, x2, embedding, linear1_weights, linear2_weights,
                             linear3_weight)

    # f32 path (tight check against reference).
    t_f32, w23_f32 = precompute_tables(embedding, linear1_weights, linear2_weights,
                                       linear3_weight, dtype=jnp.float32)
    out = jax.block_until_ready(mlp_forward(x1, x2, t_f32, w23_f32, vocab=vocab_size))
    assert out.shape == (batch, vocab_size)
    assert jnp.allclose(out, ref, atol=1e-3, rtol=1e-3), "Pallas f32 output mismatch vs reference"

    # bf16 table path (v6e / v7x MXU fast path), f32 accumulation; loose tolerance.
    t_bf16, w23_bf16 = precompute_tables(embedding, linear1_weights, linear2_weights,
                                         linear3_weight, dtype=jnp.bfloat16)
    out_bf16 = jax.block_until_ready(
        mlp_forward(x1, x2, t_bf16, w23_bf16, vocab=vocab_size))
    rel_err = jnp.max(jnp.abs(out_bf16 - ref)) / jnp.max(jnp.abs(ref))
    assert rel_err < 5e-2, f"Pallas bf16 output mismatch vs reference (rel_err={rel_err})"

    print("KERNEL_OK")
</pallas_src>

<mosaic_0001>
module attributes {stable_mosaic.version = 11 : i64} {
  func.func @_mlp_kernel(%arg0: i32, %arg1: memref<8x1xi32, #tpu.memory_space<vmem>>, %arg2: memref<8x1xi32, #tpu.memory_space<vmem>>, %arg3: memref<128x64xf32, #tpu.memory_space<vmem>>, %arg4: memref<64x128xf32, #tpu.memory_space<vmem>>, %arg5: memref<8x128xf32, #tpu.memory_space<vmem>>) attributes {dimension_semantics = [#tpu.dimension_semantics<parallel>], iteration_bounds = array<i64: 1>, scalar_prefetch = 0 : i64, scratch_operands = 0 : i64, tpu.core_type = #tpu.core_type<tc>, window_params = [{transform_indices = @transform_0, window_bounds = array<i64: 8, 1>}, {transform_indices = @transform_1, window_bounds = array<i64: 8, 1>}, {pipeline_mode = #tpu.pipeline_mode<synchronous>, transform_indices = @transform_2, window_bounds = array<i64: 128, 64>}, {pipeline_mode = #tpu.pipeline_mode<synchronous>, transform_indices = @transform_3, window_bounds = array<i64: 64, 128>}, {transform_indices = @transform_4, window_bounds = array<i64: 8, 128>}]} {
    %0 = tpu.iota {dimensions = array<i32: 1>} : vector<8x128xi32>
    %c0 = arith.constant 0 : index
    %c0_0 = arith.constant 0 : index
    %1 = vector.load %arg1[%c0, %c0_0] : memref<8x1xi32, #tpu.memory_space<vmem>>, vector<8x1xi32>
    %2 = vector.broadcast %1 : vector<8x1xi32> to vector<8x128xi32>
    %3 = arith.cmpi eq, %0, %2 : vector<8x128xi32>
    %cst = arith.constant 1.000000e+00 : f32
    %cst_1 = arith.constant 0.000000e+00 : f32
    %4 = vector.broadcast %cst : f32 to vector<8x128xf32>
    %5 = vector.broadcast %cst_1 : f32 to vector<8x128xf32>
    %6 = arith.select %3, %4, %5 : vector<8x128xi1>, vector<8x128xf32>
    %c0_2 = arith.constant 0 : index
    %c0_3 = arith.constant 0 : index
    %7 = vector.load %arg2[%c0_2, %c0_3] : memref<8x1xi32, #tpu.memory_space<vmem>>, vector<8x1xi32>
    %8 = vector.broadcast %7 : vector<8x1xi32> to vector<8x128xi32>
    %9 = arith.cmpi eq, %0, %8 : vector<8x128xi32>
    %cst_4 = arith.constant 1.000000e+00 : f32
    %cst_5 = arith.constant 0.000000e+00 : f32
    %10 = vector.broadcast %cst_4 : f32 to vector<8x128xf32>
    %11 = vector.broadcast %cst_5 : f32 to vector<8x128xf32>
    %12 = arith.select %9, %10, %11 : vector<8x128xi1>, vector<8x128xf32>
    %13 = arith.addf %6, %12 : vector<8x128xf32>
    %c0_6 = arith.constant 0 : index
    %c0_7 = arith.constant 0 : index
    %14 = vector.load %arg3[%c0_6, %c0_7] : memref<128x64xf32, #tpu.memory_space<vmem>>, vector<128x64xf32>
    %cst_8 = arith.constant dense<0.000000e+00> : vector<8x64xf32>
    %15 = tpu.matmul %13, %14, %cst_8 {dimension_numbers = #tpu.dot_dimension_numbers<[1], [0], [0], [1], [0, 0, 1, 1], [], []>} : vector<8x128xf32>, vector<128x64xf32>, vector<8x64xf32> -> vector<8x64xf32>
    %16 = arith.negf %15 : vector<8x64xf32>
    %17 = math.exp %16 : vector<8x64xf32>
    %cst_9 = arith.constant 1.000000e+00 : f32
    %18 = vector.broadcast %cst_9 : f32 to vector<8x64xf32>
    %19 = arith.addf %18, %17 : vector<8x64xf32>
    %20 = arith.divf %18, %19 : vector<8x64xf32>
    %21 = arith.mulf %15, %20 : vector<8x64xf32>
    %c0_10 = arith.constant 0 : index
    %c0_11 = arith.constant 0 : index
    %22 = vector.load %arg4[%c0_10, %c0_11] : memref<64x128xf32, #tpu.memory_space<vmem>>, vector<64x128xf32>
    %cst_12 = arith.constant dense<0.000000e+00> : vector<8x128xf32>
    %23 = tpu.matmul %21, %22, %cst_12 {dimension_numbers = #tpu.dot_dimension_numbers<[1], [0], [0], [1], [0, 0, 1, 1], [], []>} : vector<8x64xf32>, vector<64x128xf32>, vector<8x128xf32> -> vector<8x128xf32>
    %c0_13 = arith.constant 0 : index
    %c0_14 = arith.constant 0 : index
    %24 = vector.load %arg5[%c0_13, %c0_14] : memref<8x128xf32, #tpu.memory_space<vmem>>, vector<8x128xf32>
    tpu.vector_store %arg5[%c0_13, %c0_14], %23 {strides = array<i32>} : memref<8x128xf32, #tpu.memory_space<vmem>>, vector<8x128xf32>,
    return
  }
  func.func @transform_0(%arg0: i32) -> (i32, i32) {
    %c0_i32 = arith.constant 0 : i32
    %c0_i32_0 = arith.constant 0 : i32
    return %arg0, %c0_i32 : i32, i32
  }
  func.func @transform_1(%arg0: i32) -> (i32, i32) {
    %c0_i32 = arith.constant 0 : i32
    %c0_i32_0 = arith.constant 0 : i32
    return %arg0, %c0_i32 : i32, i32
  }
  func.func @transform_2(%arg0: i32) -> (i32, i32) {
    %c0_i32 = arith.constant 0 : i32
    %c0_i32_0 = arith.constant 0 : i32
    %c0_i32_1 = arith.constant 0 : i32
    return %c0_i32, %c0_i32_0 : i32, i32
  }
  func.func @transform_3(%arg0: i32) -> (i32, i32) {
    %c0_i32 = arith.constant 0 : i32
    %c0_i32_0 = arith.constant 0 : i32
    %c0_i32_1 = arith.constant 0 : i32
    return %c0_i32, %c0_i32_0 : i32, i32
  }
  func.func @transform_4(%arg0: i32) -> (i32, i32) {
    %c0_i32 = arith.constant 0 : i32
    %c0_i32_0 = arith.constant 0 : i32
    return %arg0, %c0_i32 : i32, i32
  }
}

</mosaic_0001>

<bundles_post_ra>
// kernel: mlp_forward.1
= control target key start
LH: loop header
LB: loop body
LE: loop exit
PB: predicated region body
PF: predicated region fallthrough
CT: control target
= control target key end

     0   :  { %v375_v2 = vmov 0   ;;  %v376_v3 = vmov 0.0|0.0   ;;  %s507_s0 = inlined_call_operand.vmem [shape: s32[8,1], index: 0, kind: input, shape index: {}]   ;;  %s508_s1 = inlined_call_operand.vmem [shape: s32[8,1], index: 1, kind: input, shape index: {}]   ;;  %s509_s2 = inlined_call_operand.vmem [shape: f32[128,64], index: 2, kind: input, shape index: {}]   ;;  %s510_s3 = inlined_call_operand.vmem [shape: f32[64,128], index: 3, kind: input, shape index: {}]   ;;  %s511_s4 = inlined_call_operand.hbm [shape: f32[8,128], index: 4, kind: output, shape index: {}]  }
   0x1   :  { %v20_v0 = vld [vmem:[%s507_s0] sm:$0xff]  ;;  %346 = vset.pattern.permute.xlu0 %v375_v2  ;;  %305 = vmatprep.subr.bf16.mxu0 %v376_v3  ;;  %v34_v4 = vld [vmem:[%s509_s2 + $0x8] sm:$0xff]  ;;  %v35_v5 = vld [vmem:[%s509_s2 + $0x10] sm:$0xff] }
   0x2   :  { %v33_v1 = vld [vmem:[%s509_s2] sm:$0xff]  ;;  %v36_v6 = vld [vmem:[%s509_s2 + $0x18] sm:$0xff]  ;;  %22 = vperm.xlu0 %346, %v20_v0   ;;  %329 = vmatprep.subr.bf16.mxu1 %v376_v3  ;;  %v38_v11 = vld [vmem:[%s509_s2 + $0x28] sm:$0xff] }
   0x3   :  { %v306_v7 = vpack.c.bf16 %v34_v4, %v33_v1  ;;  %v26_v8 = vld [vmem:[%s508_s1] sm:$0xff]  ;;  %v309_v9 = vpack.c.bf16 %v36_v6, %v35_v5 }
   0x4   :  { %v37_v10 = vld [vmem:[%s509_s2 + $0x20] sm:$0xff] }
   0x5   :  { %307 = vmatpush3.bf16.msra.mxu0 %v306_v7 }
   0x6   :  { %308 = vmatprep.subr.bf16.mxu0 %v376_v3  ;;  %28 = vperm.xlu0 %346, %v26_v8  }
   0x7   :  { %9 = vsyncpa [#allocation3], 0  ;;  %v312_v12 = vpack.c.bf16 %v38_v11, %v37_v10  ;;  %v39_v13 = vld [vmem:[%s509_s2 + $0x30] sm:$0xff]  ;;  %v40_v14 = vld [vmem:[%s509_s2 + $0x38] sm:$0xff]  ;;  %vm377_vm0 = vmmov 0   ;;  %v378_v15 = vmov 0.0   ;;  %v18_v29 = vlaneseq }
   0x8   :  { %283 = vmatprep.mubr.msk.f32.mxu0 %vm377_vm0, %v378_v15  ;;  %302 = vmatprep.mubr.msk.f32.mxu1 %vm377_vm0, %v378_v15  ;;  %v315_v16 = vpack.c.bf16 %v40_v14, %v39_v13  ;;  %v41_v17 = vld [vmem:[%s509_s2 + $0x40] sm:$0xff]  ;;  %v42_v18 = vld [vmem:[%s509_s2 + $0x48] sm:$0xff]  ;;  %v43_v20 = vld [vmem:[%s509_s2 + $0x50] sm:$0xff]  ;;  %vm134_vm3 = vcmask 523264   ;;  %s379_s10 = smov [#allocation2]  }
   0x9   :  { %310 = vmatpush3.bf16.msra.mxu0 %v309_v9  ;;  %v318_v19 = vpack.c.bf16 %v42_v18, %v41_v17  ;;  %v44_v21 = vld [vmem:[%s509_s2 + $0x58] sm:$0xff]  ;;  %v45_v23 = vld [vmem:[%s509_s2 + $0x60] sm:$0xff]  ;;  %v46_v24 = vld [vmem:[%s509_s2 + $0x68] sm:$0xff]  ;;  %v19_v30 = vand.u32 127, %v18_v29  ;;  %s215_s11 = sshll.u32 %s379_s10, 4  ;;  %s216_s11 = int_to_ptr.vmem [resolvable:$true] %s215_s11 }
   0xa   :  { %311 = vmatprep.subr.bf16.mxu0 %v376_v3  ;;  %v321_v22 = vpack.c.bf16 %v44_v21, %v43_v20  ;;  %v324_v25 = vpack.c.bf16 %v46_v24, %v45_v23  ;;  %v47_v26 = vld [vmem:[%s509_s2 + $0x70] sm:$0xff]  ;;  %v48_v27 = vld [vmem:[%s509_s2 + $0x78] sm:$0xff]  ;;  %v126_v36 = vld [vmem:[%s510_s3] sm:$0xff]  ;;  %p356_p1 = scmp.lt.s32.totalorder %s216_s11, %s216_s11 }
   0xb   :  { %v327_v28 = vpack.c.bf16 %v48_v27, %v47_v26  ;;  %v127_v37 = vld [vmem:[%s510_s3 + $0x8] sm:$0xff]  ;;  %v128_v39 = vld [vmem:[%s510_s3 + $0x10] sm:$0xff]  ;;  %v129_v40 = vld [vmem:[%s510_s3 + $0x18] sm:$0xff] }
   0xc   :  { %v330_v38 = vpack.c.bf16 %v127_v37, %v126_v36  ;;  %v333_v41 = vpack.c.bf16 %v129_v40, %v128_v39  ;;  %v130_v42 = vld [vmem:[%s510_s3 + $0x20] sm:$0xff]  ;;  %v131_v43 = vld [vmem:[%s510_s3 + $0x28] sm:$0xff]  ;;  %v132_v45 = vld [vmem:[%s510_s3 + $0x30] sm:$0xff] }
   0xd   :  { %313 = vmatpush3.bf16.msra.mxu0 %v312_v12  ;;  %v336_v44 = vpack.c.bf16 %v131_v43, %v130_v42  ;;  %v133_v46 = vld [vmem:[%s510_s3 + $0x38] sm:$0xff]  ;;  %s351_s3 = scalar_lea.vmem %s216_s11, 128 }
   0xe   :  { %314 = vmatprep.subr.bf16.mxu0 %v376_v3  ;;  %331 = vmatpush3.bf16.msra.mxu1 %v330_v38  ;;  %v339_v47 = vpack.c.bf16 %v133_v46, %v132_v45  ;;  %p352_p0 = scmp.ne.s32.totalorder %s216_s11, %s351_s3  ;;  %p357_p2 = scmp.lt.s32.totalorder %s351_s3, %s351_s3 }
   0xf   :  { %332 = vmatprep.subr.bf16.mxu1 %v376_v3 }
  0x10   :  { %p358_p3 = por %p357_p2, %p356_p1 }
  0x11   :  { %316 = vmatpush3.bf16.msra.mxu0 %v315_v16 }
  0x12   :  { %317 = vmatprep.subr.bf16.mxu0 %v376_v3  ;;  %334 = vmatpush3.bf16.msra.mxu1 %v333_v41  ;;  %p359_p4 = pnand %p358_p3, %p352_p0 }
  0x13   :  { %335 = vmatprep.subr.bf16.mxu1 %v376_v3 }
  0x15   :  { %319 = vmatpush3.bf16.msra.mxu0 %v318_v19 }
  0x16   :  { %320 = vmatprep.subr.bf16.mxu0 %v376_v3  ;;  %337 = vmatpush3.bf16.msra.mxu1 %v336_v44 }
  0x17   :  { %338 = vmatprep.subr.bf16.mxu1 %v376_v3 }
  0x19   :  { %322 = vmatpush3.bf16.msra.mxu0 %v321_v22 }
  0x1a   :  { %323 = vmatprep.subr.bf16.mxu0 %v376_v3  ;;  %340 = vmatpush3.bf16.msra.mxu1 %v339_v47 }
  0x1d   :  { %325 = vmatpush3.bf16.msra.mxu0 %v324_v25 }
  0x1e   :  { %326 = vmatprep.subr.bf16.mxu0 %v376_v3 }
  0x21   :  { %328 = vmatpush3.bf16.msra.mxu0 %v327_v28 }
  0x81   :  { %v23_v31 = vpop.permute.xlu0 %22 }
  0x82   :  { %vm24_vm1 = vcmp.eq.s32.totalorder %v19_v30, %v23_v31 }
  0x83   :  { %v25_v33 = vsel %vm24_vm1, 1.0, %v378_v15 }
  0x85   :  { %v29_v32 = vpop.permute.xlu0 %28 }
  0x86   :  { %vm30_vm2 = vcmp.eq.s32.totalorder %v19_v30, %v29_v32 }
  0x87   :  { %v31_v34 = vsel %vm30_vm2, 1.0, %v378_v15 }
  0x88   :  { %v32_v35 = vadd.f32 %v31_v34, %v25_v33 }
  0x8a   :  { %284 = vmatmul.mubr.f32.vlgmr.msra.gmra.mrb[0].mxu0 %v32_v35 }
 0x15d   :  { %v115_v48 = vpop.f32.mrb[0].mxu0 }
 0x15e   :  { %v223_v49 = vmul.f32 -1.442695, %v115_v48  ;;  %v285_v50 = vpop.f32.mrb[1].mxu0 }
 0x160   :  { %347 = vpow2.f32 %v223_v49 }
 0x16a   :  { %v348_v51 = vpop.eup %347 }
 0x16b   :  { %v122_v52 = vadd.f32 1.0, %v348_v51 }
 0x16d   :  { %349 = vrcp.f32 %v122_v52 }
 0x177   :  { %v350_v53 = vpop.eup %349 }
 0x178   :  { %v125_v54 = vmul.f32 %v350_v53, %v115_v48 }
 0x17a   :  { %303 = vmatmul.mubr.msk.f32.vlgmr.msra.gmra.mrb[0].mxu1 %vm134_vm3, %v125_v54 }
 0x24d   :  { %v204_v55 = vpop.f32.mrb[0].mxu1 }
 0x24e   :  { %208 = vst [vmem:[#allocation2] sm:$0xff] %v204_v55  ;;  %v304_v56 = vpop.f32.mrb[1].mxu1 }
 0x24f   :  { %362 = shalt.err (!%p359_p4)
}
 0x250   :  { %s363_s14 = scalar_lea.hbm %s511_s4, 128 }
 0x251   :  { %p364_p5 = scmp.ne.s32.totalorder %s511_s4, %s363_s14  ;;  %p367_p6 = scmp.lt.u32.totalorder %s363_s14, %s511_s4 }
 0x253   :  { %p369_p7 = pnand %p367_p6, %p364_p5 }
 0x255   :  { %372 = shalt.err (!%p369_p7)
}
 0x256   :  { %218 = dma.vmem_to_hbm [thread:$0]  %s216_s11, 128, %s511_s4, [#allocation3]  }
 0x257   :  { %373 = dma.done.wait [#allocation3], 128  }
 0x258   :  { %374 = vsyncadd [#allocation3], 4294967168 }
 0x259   :  { %222 = vsyncpa [#allocation3], 1 }

</bundles_post_ra>
